<compile_context>
chip_gen: v6e
topology: v6e:2x2x1
jax: 0.10.0
libtpu: 0.0.40
codegen_flags: <defaults>
</compile_context>

<pallas_src>
import jax
import jax.numpy as jnp
from jax.experimental import pallas as pl
from jax.experimental.pallas import tpu as pltpu


def _critic_kernel(obs_ref, act_ref, w1o_ref, w1a_ref, b1_ref, g_ref, bt_ref,
                   w2_ref, b2_ref, w3_ref, b3_ref, q_ref):
    """Both Q heads in one step; activations are (Bt, 2H), head h in lane-half h."""
    two_h = b1_ref.shape[-1]
    h = two_h // 2

    # --- Linear 1 (obs part + action part; replaces torch.cat + matmul) ---
    xo = obs_ref[...].astype(jnp.bfloat16)
    xa = act_ref[...].astype(jnp.bfloat16)
    h1 = (jnp.dot(xo, w1o_ref[...], preferred_element_type=jnp.float32)
          + jnp.dot(xa, w1a_ref[...], preferred_element_type=jnp.float32)
          + b1_ref[...])                                         # (Bt, 2H) f32

    # --- Per-head LayerNorm (eps=1e-5, biased variance) on each lane half ---
    def _norm(v):
        mu = jnp.mean(v, axis=-1, keepdims=True)
        var = jnp.mean((v - mu) * (v - mu), axis=-1, keepdims=True)
        return (v - mu) * jax.lax.rsqrt(var + 1e-5)

    hn = jnp.concatenate([_norm(h1[:, :h]), _norm(h1[:, h:])], axis=-1)
    hn = hn * g_ref[...] + bt_ref[...]

    # --- Tanh ---
    t = jnp.tanh(hn)

    # --- Linear 2: block-diagonal (2H, 2H) -> both heads in one MXU dot ---
    h2 = jnp.dot(t.astype(jnp.bfloat16), w2_ref[...],
                 preferred_element_type=jnp.float32) + b2_ref[...]

    # --- ELU (alpha=1); clamp the exp argument so the dead branch can't overflow ---
    e = jnp.where(h2 > 0.0, h2, jnp.exp(jnp.minimum(h2, 0.0)) - 1.0)

    # --- Linear 3 (H -> 1) as VPU multiply + XLU lane reduction (skip the MXU) ---
    prod = e * w3_ref[...]                                       # (Bt, 2H) f32
    q1 = jnp.sum(prod[:, :h], axis=-1, keepdims=True)            # (Bt, 1)
    q2 = jnp.sum(prod[:, h:], axis=-1, keepdims=True)            # (Bt, 1)
    q_ref[...] = jnp.concatenate([q1, q2], axis=-1) + b3_ref[...]  # (Bt, 2)


def pack_params(raw, obs_dim):
    """Fuse the per-head (leading dim 2) params into the kernel layout."""
    w1 = raw["w1"]                                    # (2, Din, H)
    hdim = w1.shape[-1]
    w1_obs = jnp.concatenate([w1[0, :obs_dim], w1[1, :obs_dim]], axis=-1)
    w1_act = jnp.concatenate([w1[0, obs_dim:], w1[1, obs_dim:]], axis=-1)
    w2 = raw["w2"]                                    # (2, H, H)
    w2_bd = jnp.zeros((2 * hdim, 2 * hdim), jnp.float32)
    w2_bd = w2_bd.at[:hdim, :hdim].set(w2[0]).at[hdim:, hdim:].set(w2[1])
    w3 = raw["w3"]                                    # (2, H, 1)
    w3_row = jnp.concatenate([w3[0, :, 0], w3[1, :, 0]], axis=-1)[None, :]
    cat1 = lambda p: jnp.concatenate([p[0], p[1]], axis=-1)  # (2,1,H) -> (1,2H)
    return {
        "w1_obs": w1_obs.astype(jnp.bfloat16),
        "w1_act": w1_act.astype(jnp.bfloat16),
        "b1": cat1(raw["b1"]).astype(jnp.float32),
        "gamma": cat1(raw["gamma"]).astype(jnp.float32),
        "beta": cat1(raw["beta"]).astype(jnp.float32),
        "w2": w2_bd.astype(jnp.bfloat16),
        "b2": cat1(raw["b2"]).astype(jnp.float32),
        "w3": w3_row.astype(jnp.float32),
        "b3": jnp.concatenate([raw["b3"][0], raw["b3"][1]], axis=-1)
              .astype(jnp.float32),                   # (1, 2)
    }


def critic_forward(obs, action, packed):
    """Returns (q1, q2), each (B, 1), matching the PyTorch Critic.forward."""
    B, obs_dim = obs.shape
    act_dim = action.shape[-1]
    two_h = packed["b1"].shape[-1]

    b_tile = B if B <= 512 else 512
    assert B % b_tile == 0, "pad batch to a multiple of 512 for large B"
    grid = (B // b_tile,)

    const = lambda i: (0, 0)          # weights resident across batch tiles
    batched = lambda i: (i, 0)

    q = pl.pallas_call(
        _critic_kernel,
        out_shape=jax.ShapeDtypeStruct((B, 2), jnp.float32),
        grid=grid,
        in_specs=[
            pl.BlockSpec((b_tile, obs_dim), batched),      # obs
            pl.BlockSpec((b_tile, act_dim), batched),      # action
            pl.BlockSpec((obs_dim, two_h), const),         # w1 (obs rows, 2 heads)
            pl.BlockSpec((act_dim, two_h), const),         # w1 (act rows, 2 heads)
            pl.BlockSpec((1, two_h), const),               # b1
            pl.BlockSpec((1, two_h), const),               # ln gamma
            pl.BlockSpec((1, two_h), const),               # ln beta
            pl.BlockSpec((two_h, two_h), const),           # w2 block-diag
            pl.BlockSpec((1, two_h), const),               # b2
            pl.BlockSpec((1, two_h), const),               # w3 rows
            pl.BlockSpec((1, 2), const),                   # b3
        ],
        out_specs=pl.BlockSpec((b_tile, 2), batched),
        compiler_params=pltpu.CompilerParams(
            dimension_semantics=("parallel",)),
    )(obs, action, packed["w1_obs"], packed["w1_act"], packed["b1"],
      packed["gamma"], packed["beta"], packed["w2"], packed["b2"],
      packed["w3"], packed["b3"])

    return q[:, 0:1], q[:, 1:2]


# ----------------------------- references -----------------------------------

def _reference_f32(obs, action, raw):
    """Pure-f32 math, exactly the PyTorch module semantics."""
    x = jnp.concatenate([obs, action], axis=-1).astype(jnp.float32)
    outs = []
    for i in range(2):
        h1 = x @ raw["w1"][i] + raw["b1"][i]
        mu = jnp.mean(h1, -1, keepdims=True)
        var = jnp.mean((h1 - mu) ** 2, -1, keepdims=True)
        hn = (h1 - mu) / jnp.sqrt(var + 1e-5) * raw["gamma"][i] + raw["beta"][i]
        t = jnp.tanh(hn)
        h2 = t @ raw["w2"][i] + raw["b2"][i]
        e = jnp.where(h2 > 0, h2, jnp.exp(h2) - 1.0)
        outs.append(e @ raw["w3"][i] + raw["b3"][i])
    return outs[0], outs[1]


def _reference_mixed(obs, action, raw):
    """Same precision strategy as the kernel: bf16 matmul operands, f32 acc."""
    x = jnp.concatenate([obs, action], axis=-1)
    outs = []
    for i in range(2):
        h1 = jnp.dot(x.astype(jnp.bfloat16), raw["w1"][i].astype(jnp.bfloat16),
                     preferred_element_type=jnp.float32) + raw["b1"][i]
        mu = jnp.mean(h1, -1, keepdims=True)
        var = jnp.mean((h1 - mu) ** 2, -1, keepdims=True)
        hn = (h1 - mu) * jax.lax.rsqrt(var + 1e-5) * raw["gamma"][i] + raw["beta"][i]
        t = jnp.tanh(hn)
        h2 = jnp.dot(t.astype(jnp.bfloat16), raw["w2"][i].astype(jnp.bfloat16),
                     preferred_element_type=jnp.float32) + raw["b2"][i]
        e = jnp.where(h2 > 0, h2, jnp.exp(jnp.minimum(h2, 0.0)) - 1.0)
        q = jnp.sum(e * raw["w3"][i][:, 0][None, :], -1, keepdims=True) + raw["b3"][i]
        outs.append(q)
    return outs[0], outs[1]


def init_params(key, din, hidden):
    """orthogonal Linear weights, zero biases, LayerNorm gamma=1 beta=0
    (mirrors h.orthogonal_init); stacked on a leading head axis of size 2."""
    orth = jax.nn.initializers.orthogonal()
    ks = jax.random.split(key, 6)
    w1 = jnp.stack([orth(ks[0], (din, hidden), jnp.float32),
                    orth(ks[1], (din, hidden), jnp.float32)])
    w2 = jnp.stack([orth(ks[2], (hidden, hidden), jnp.float32),
                    orth(ks[3], (hidden, hidden), jnp.float32)])
    w3 = jnp.stack([orth(ks[4], (hidden, 1), jnp.float32),
                    orth(ks[5], (hidden, 1), jnp.float32)])
    return {
        "w1": w1, "b1": jnp.zeros((2, 1, hidden), jnp.float32),
        "gamma": jnp.ones((2, 1, hidden), jnp.float32),
        "beta": jnp.zeros((2, 1, hidden), jnp.float32),
        "w2": w2, "b2": jnp.zeros((2, 1, hidden), jnp.float32),
        "w3": w3, "b3": jnp.zeros((2, 1, 1), jnp.float32),
    }


if __name__ == "__main__":
    B, OBS_DIM, ACT_DIM, HIDDEN = 8, 24, 8, 32
    key = jax.random.PRNGKey(0)
    k_obs, k_act, k_par = jax.random.split(key, 3)

    obs = jax.random.normal(k_obs, (B, OBS_DIM), dtype=jnp.float32)
    action = jax.random.normal(k_act, (B, ACT_DIM), dtype=jnp.float32)
    raw = init_params(k_par, OBS_DIM + ACT_DIM, HIDDEN)
    packed = pack_params(raw, OBS_DIM)       # one-time packing (off hot path)

    q1, q2 = critic_forward(obs, action, packed)
    jax.block_until_ready((q1, q2))
    assert q1.shape == (B, 1) and q2.shape == (B, 1)

    # Tight check against a reference using the same precision strategy.
    m1, m2 = _reference_mixed(obs, action, raw)
    assert jnp.allclose(q1, m1, atol=1e-4, rtol=1e-4)
    assert jnp.allclose(q2, m2, atol=1e-4, rtol=1e-4)

    # Loose sanity check against the pure-f32 PyTorch-equivalent math
    # (difference is only bf16 weight/activation rounding in the matmuls).
    f1, f2 = _reference_f32(obs, action, raw)
    assert jnp.allclose(q1, f1, atol=1e-1, rtol=1e-1)
    assert jnp.allclose(q2, f2, atol=1e-1, rtol=1e-1)

    print("KERNEL_OK")
</pallas_src>

<mosaic_0001>
module attributes {stable_mosaic.version = 11 : i64} {
  func.func @_critic_kernel(%arg0: i32, %arg1: memref<8x24xf32, #tpu.memory_space<vmem>>, %arg2: memref<8x8xf32, #tpu.memory_space<vmem>>, %arg3: memref<24x64xbf16, #tpu.memory_space<vmem>>, %arg4: memref<8x64xbf16, #tpu.memory_space<vmem>>, %arg5: memref<1x64xf32, #tpu.memory_space<vmem>>, %arg6: memref<1x64xf32, #tpu.memory_space<vmem>>, %arg7: memref<1x64xf32, #tpu.memory_space<vmem>>, %arg8: memref<64x64xbf16, #tpu.memory_space<vmem>>, %arg9: memref<1x64xf32, #tpu.memory_space<vmem>>, %arg10: memref<1x64xf32, #tpu.memory_space<vmem>>, %arg11: memref<1x2xf32, #tpu.memory_space<vmem>>, %arg12: memref<8x2xf32, #tpu.memory_space<vmem>>) attributes {dimension_semantics = [#tpu.dimension_semantics<parallel>], iteration_bounds = array<i64: 1>, scalar_prefetch = 0 : i64, scratch_operands = 0 : i64, tpu.core_type = #tpu.core_type<tc>, window_params = [{transform_indices = @transform_0, window_bounds = array<i64: 8, 24>}, {transform_indices = @transform_1, window_bounds = array<i64: 8, 8>}, {pipeline_mode = #tpu.pipeline_mode<synchronous>, transform_indices = @transform_2, window_bounds = array<i64: 24, 64>}, {pipeline_mode = #tpu.pipeline_mode<synchronous>, transform_indices = @transform_3, window_bounds = array<i64: 8, 64>}, {pipeline_mode = #tpu.pipeline_mode<synchronous>, transform_indices = @transform_4, window_bounds = array<i64: 1, 64>}, {pipeline_mode = #tpu.pipeline_mode<synchronous>, transform_indices = @transform_5, window_bounds = array<i64: 1, 64>}, {pipeline_mode = #tpu.pipeline_mode<synchronous>, transform_indices = @transform_6, window_bounds = array<i64: 1, 64>}, {pipeline_mode = #tpu.pipeline_mode<synchronous>, transform_indices = @transform_7, window_bounds = array<i64: 64, 64>}, {pipeline_mode = #tpu.pipeline_mode<synchronous>, transform_indices = @transform_8, window_bounds = array<i64: 1, 64>}, {pipeline_mode = #tpu.pipeline_mode<synchronous>, transform_indices = @transform_9, window_bounds = array<i64: 1, 64>}, {pipeline_mode = #tpu.pipeline_mode<synchronous>, transform_indices = @transform_10, window_bounds = array<i64: 1, 2>}, {transform_indices = @transform_11, window_bounds = array<i64: 8, 2>}]} {
    %c0 = arith.constant 0 : index
    %c0_0 = arith.constant 0 : index
    %0 = vector.load %arg1[%c0, %c0_0] : memref<8x24xf32, #tpu.memory_space<vmem>>, vector<8x24xf32>
    %1 = arith.truncf %0 : vector<8x24xf32> to vector<8x24xbf16>
    %c0_1 = arith.constant 0 : index
    %c0_2 = arith.constant 0 : index
    %2 = vector.load %arg2[%c0_1, %c0_2] : memref<8x8xf32, #tpu.memory_space<vmem>>, vector<8x8xf32>
    %3 = arith.truncf %2 : vector<8x8xf32> to vector<8x8xbf16>
    %c0_3 = arith.constant 0 : index
    %c0_4 = arith.constant 0 : index
    %4 = vector.load %arg3[%c0_3, %c0_4] : memref<24x64xbf16, #tpu.memory_space<vmem>>, vector<24x64xbf16>
    %cst = arith.constant dense<0.000000e+00> : vector<8x64xf32>
    %5 = tpu.matmul %1, %4, %cst {dimension_numbers = #tpu.dot_dimension_numbers<[1], [0], [0], [1], [0, 0, 1, 1], [], []>} : vector<8x24xbf16>, vector<24x64xbf16>, vector<8x64xf32> -> vector<8x64xf32>
    %c0_5 = arith.constant 0 : index
    %c0_6 = arith.constant 0 : index
    %6 = vector.load %arg4[%c0_5, %c0_6] : memref<8x64xbf16, #tpu.memory_space<vmem>>, vector<8x64xbf16>
    %cst_7 = arith.constant dense<0.000000e+00> : vector<8x64xf32>
    %7 = tpu.matmul %3, %6, %cst_7 {dimension_numbers = #tpu.dot_dimension_numbers<[1], [0], [0], [1], [0, 0, 1, 1], [], []>} : vector<8x8xbf16>, vector<8x64xbf16>, vector<8x64xf32> -> vector<8x64xf32>
    %8 = arith.addf %5, %7 : vector<8x64xf32>
    %c0_8 = arith.constant 0 : index
    %c0_9 = arith.constant 0 : index
    %9 = vector.load %arg5[%c0_8, %c0_9] : memref<1x64xf32, #tpu.memory_space<vmem>>, vector<1x64xf32>
    %10 = vector.broadcast %9 : vector<1x64xf32> to vector<8x64xf32>
    %11 = arith.addf %8, %10 : vector<8x64xf32>
    %12 = vector.extract_strided_slice %11 {offsets = [0, 0], sizes = [8, 32], strides = [1, 1]} : vector<8x64xf32> to vector<8x32xf32>
    %cst_10 = arith.constant dense<0.000000e+00> : vector<8xf32>
    %13 = vector.multi_reduction <add>, %12, %cst_10 [1] : vector<8x32xf32> to vector<8xf32>
    %14 = vector.shape_cast %13 : vector<8xf32> to vector<8x1xf32>
    %cst_11 = arith.constant 3.200000e+01 : f32
    %15 = vector.broadcast %cst_11 : f32 to vector<8x1xf32>
    %16 = arith.divf %14, %15 : vector<8x1xf32>
    %17 = vector.broadcast %16 : vector<8x1xf32> to vector<8x32xf32>
    %18 = arith.subf %12, %17 : vector<8x32xf32>
    %19 = vector.broadcast %16 : vector<8x1xf32> to vector<8x32xf32>
    %20 = arith.subf %12, %19 : vector<8x32xf32>
    %21 = arith.mulf %18, %20 : vector<8x32xf32>
    %cst_12 = arith.constant dense<0.000000e+00> : vector<8xf32>
    %22 = vector.multi_reduction <add>, %21, %cst_12 [1] : vector<8x32xf32> to vector<8xf32>
    %23 = vector.shape_cast %22 : vector<8xf32> to vector<8x1xf32>
    %cst_13 = arith.constant 3.200000e+01 : f32
    %24 = vector.broadcast %cst_13 : f32 to vector<8x1xf32>
    %25 = arith.divf %23, %24 : vector<8x1xf32>
    %26 = vector.broadcast %16 : vector<8x1xf32> to vector<8x32xf32>
    %27 = arith.subf %12, %26 : vector<8x32xf32>
    %cst_14 = arith.constant 9.99999974E-6 : f32
    %28 = vector.broadcast %cst_14 : f32 to vector<8x1xf32>
    %29 = arith.addf %25, %28 : vector<8x1xf32>
    %30 = math.rsqrt %29 : vector<8x1xf32>
    %31 = vector.broadcast %30 : vector<8x1xf32> to vector<8x32xf32>
    %32 = arith.mulf %27, %31 : vector<8x32xf32>
    %33 = vector.extract_strided_slice %11 {offsets = [0, 32], sizes = [8, 32], strides = [1, 1]} : vector<8x64xf32> to vector<8x32xf32>
    %cst_15 = arith.constant dense<0.000000e+00> : vector<8xf32>
    %34 = vector.multi_reduction <add>, %33, %cst_15 [1] : vector<8x32xf32> to vector<8xf32>
    %35 = vector.shape_cast %34 : vector<8xf32> to vector<8x1xf32>
    %cst_16 = arith.constant 3.200000e+01 : f32
    %36 = vector.broadcast %cst_16 : f32 to vector<8x1xf32>
    %37 = arith.divf %35, %36 : vector<8x1xf32>
    %38 = vector.broadcast %37 : vector<8x1xf32> to vector<8x32xf32>
    %39 = arith.subf %33, %38 : vector<8x32xf32>
    %40 = vector.broadcast %37 : vector<8x1xf32> to vector<8x32xf32>
    %41 = arith.subf %33, %40 : vector<8x32xf32>
    %42 = arith.mulf %39, %41 : vector<8x32xf32>
    %cst_17 = arith.constant dense<0.000000e+00> : vector<8xf32>
    %43 = vector.multi_reduction <add>, %42, %cst_17 [1] : vector<8x32xf32> to vector<8xf32>
    %44 = vector.shape_cast %43 : vector<8xf32> to vector<8x1xf32>
    %cst_18 = arith.constant 3.200000e+01 : f32
    %45 = vector.broadcast %cst_18 : f32 to vector<8x1xf32>
    %46 = arith.divf %44, %45 : vector<8x1xf32>
    %47 = vector.broadcast %37 : vector<8x1xf32> to vector<8x32xf32>
    %48 = arith.subf %33, %47 : vector<8x32xf32>
    %cst_19 = arith.constant 9.99999974E-6 : f32
    %49 = vector.broadcast %cst_19 : f32 to vector<8x1xf32>
    %50 = arith.addf %46, %49 : vector<8x1xf32>
    %51 = math.rsqrt %50 : vector<8x1xf32>
    %52 = vector.broadcast %51 : vector<8x1xf32> to vector<8x32xf32>
    %53 = arith.mulf %48, %52 : vector<8x32xf32>
    %54 = tpu.concatenate %32, %53 in 1 : vector<8x32xf32>, vector<8x32xf32> -> vector<8x64xf32>
    %c0_20 = arith.constant 0 : index
    %c0_21 = arith.constant 0 : index
    %55 = vector.load %arg6[%c0_20, %c0_21] : memref<1x64xf32, #tpu.memory_space<vmem>>, vector<1x64xf32>
    %56 = vector.broadcast %55 : vector<1x64xf32> to vector<8x64xf32>
    %57 = arith.mulf %54, %56 : vector<8x64xf32>
    %c0_22 = arith.constant 0 : index
    %c0_23 = arith.constant 0 : index
    %58 = vector.load %arg7[%c0_22, %c0_23] : memref<1x64xf32, #tpu.memory_space<vmem>>, vector<1x64xf32>
    %59 = vector.broadcast %58 : vector<1x64xf32> to vector<8x64xf32>
    %60 = arith.addf %57, %59 : vector<8x64xf32>
    %61 = math.tanh %60 : vector<8x64xf32>
    %62 = arith.truncf %61 : vector<8x64xf32> to vector<8x64xbf16>
    %c0_24 = arith.constant 0 : index
    %c0_25 = arith.constant 0 : index
    %63 = vector.load %arg8[%c0_24, %c0_25] : memref<64x64xbf16, #tpu.memory_space<vmem>>, vector<64x64xbf16>
    %cst_26 = arith.constant dense<0.000000e+00> : vector<8x64xf32>
    %64 = tpu.matmul %62, %63, %cst_26 {dimension_numbers = #tpu.dot_dimension_numbers<[1], [0], [0], [1], [0, 0, 1, 1], [], []>} : vector<8x64xbf16>, vector<64x64xbf16>, vector<8x64xf32> -> vector<8x64xf32>
    %c0_27 = arith.constant 0 : index
    %c0_28 = arith.constant 0 : index
    %65 = vector.load %arg9[%c0_27, %c0_28] : memref<1x64xf32, #tpu.memory_space<vmem>>, vector<1x64xf32>
    %66 = vector.broadcast %65 : vector<1x64xf32> to vector<8x64xf32>
    %67 = arith.addf %64, %66 : vector<8x64xf32>
    %cst_29 = arith.constant 0.000000e+00 : f32
    %68 = vector.broadcast %cst_29 : f32 to vector<8x64xf32>
    %69 = arith.cmpf ogt, %67, %68 : vector<8x64xf32>
    %cst_30 = arith.constant 0.000000e+00 : f32
    %70 = vector.broadcast %cst_30 : f32 to vector<8x64xf32>
    %71 = arith.minimumf %67, %70 : vector<8x64xf32>
    %72 = math.exp %71 : vector<8x64xf32>
    %cst_31 = arith.constant 1.000000e+00 : f32
    %73 = vector.broadcast %cst_31 : f32 to vector<8x64xf32>
    %74 = arith.subf %72, %73 : vector<8x64xf32>
    %75 = arith.select %69, %67, %74 : vector<8x64xi1>, vector<8x64xf32>
    %c0_32 = arith.constant 0 : index
    %c0_33 = arith.constant 0 : index
    %76 = vector.load %arg10[%c0_32, %c0_33] : memref<1x64xf32, #tpu.memory_space<vmem>>, vector<1x64xf32>
    %77 = vector.broadcast %76 : vector<1x64xf32> to vector<8x64xf32>
    %78 = arith.mulf %75, %77 : vector<8x64xf32>
    %79 = vector.extract_strided_slice %78 {offsets = [0, 0], sizes = [8, 32], strides = [1, 1]} : vector<8x64xf32> to vector<8x32xf32>
    %cst_34 = arith.constant dense<0.000000e+00> : vector<8xf32>
    %80 = vector.multi_reduction <add>, %79, %cst_34 [1] : vector<8x32xf32> to vector<8xf32>
    %81 = vector.shape_cast %80 : vector<8xf32> to vector<8x1xf32>
    %82 = vector.extract_strided_slice %78 {offsets = [0, 32], sizes = [8, 32], strides = [1, 1]} : vector<8x64xf32> to vector<8x32xf32>
    %cst_35 = arith.constant dense<0.000000e+00> : vector<8xf32>
    %83 = vector.multi_reduction <add>, %82, %cst_35 [1] : vector<8x32xf32> to vector<8xf32>
    %84 = vector.shape_cast %83 : vector<8xf32> to vector<8x1xf32>
    %85 = tpu.concatenate %81, %84 in 1 : vector<8x1xf32>, vector<8x1xf32> -> vector<8x2xf32>
    %c0_36 = arith.constant 0 : index
    %c0_37 = arith.constant 0 : index
    %86 = vector.load %arg11[%c0_36, %c0_37] : memref<1x2xf32, #tpu.memory_space<vmem>>, vector<1x2xf32>
    %87 = vector.broadcast %86 : vector<1x2xf32> to vector<8x2xf32>
    %88 = arith.addf %85, %87 : vector<8x2xf32>
    %c0_38 = arith.constant 0 : index
    %c0_39 = arith.constant 0 : index
    %89 = vector.load %arg12[%c0_38, %c0_39] : memref<8x2xf32, #tpu.memory_space<vmem>>, vector<8x2xf32>
    tpu.vector_store %arg12[%c0_38, %c0_39], %88 {strides = array<i32>} : memref<8x2xf32, #tpu.memory_space<vmem>>, vector<8x2xf32>,
    return
  }
  func.func @transform_0(%arg0: i32) -> (i32, i32) {
    %c0_i32 = arith.constant 0 : i32
    %c0_i32_0 = arith.constant 0 : i32
    return %arg0, %c0_i32 : i32, i32
  }
  func.func @transform_1(%arg0: i32) -> (i32, i32) {
    %c0_i32 = arith.constant 0 : i32
    %c0_i32_0 = arith.constant 0 : i32
    return %arg0, %c0_i32 : i32, i32
  }
  func.func @transform_2(%arg0: i32) -> (i32, i32) {
    %c0_i32 = arith.constant 0 : i32
    %c0_i32_0 = arith.constant 0 : i32
    %c0_i32_1 = arith.constant 0 : i32
    return %c0_i32, %c0_i32_0 : i32, i32
  }
  func.func @transform_3(%arg0: i32) -> (i32, i32) {
    %c0_i32 = arith.constant 0 : i32
    %c0_i32_0 = arith.constant 0 : i32
    %c0_i32_1 = arith.constant 0 : i32
    return %c0_i32, %c0_i32_0 : i32, i32
  }
  func.func @transform_4(%arg0: i32) -> (i32, i32) {
    %c0_i32 = arith.constant 0 : i32
    %c0_i32_0 = arith.constant 0 : i32
    %c0_i32_1 = arith.constant 0 : i32
    return %c0_i32, %c0_i32_0 : i32, i32
  }
  func.func @transform_5(%arg0: i32) -> (i32, i32) {
    %c0_i32 = arith.constant 0 : i32
    %c0_i32_0 = arith.constant 0 : i32
    %c0_i32_1 = arith.constant 0 : i32
    return %c0_i32, %c0_i32_0 : i32, i32
  }
  func.func @transform_6(%arg0: i32) -> (i32, i32) {
    %c0_i32 = arith.constant 0 : i32
    %c0_i32_0 = arith.constant 0 : i32
    %c0_i32_1 = arith.constant 0 : i32
    return %c0_i32, %c0_i32_0 : i32, i32
  }
  func.func @transform_7(%arg0: i32) -> (i32, i32) {
    %c0_i32 = arith.constant 0 : i32
    %c0_i32_0 = arith.constant 0 : i32
    %c0_i32_1 = arith.constant 0 : i32
    return %c0_i32, %c0_i32_0 : i32, i32
  }
  func.func @transform_8(%arg0: i32) -> (i32, i32) {
    %c0_i32 = arith.constant 0 : i32
    %c0_i32_0 = arith.constant 0 : i32
    %c0_i32_1 = arith.constant 0 : i32
    return %c0_i32, %c0_i32_0 : i32, i32
  }
  func.func @transform_9(%arg0: i32) -> (i32, i32) {
    %c0_i32 = arith.constant 0 : i32
    %c0_i32_0 = arith.constant 0 : i32
    %c0_i32_1 = arith.constant 0 : i32
    return %c0_i32, %c0_i32_0 : i32, i32
  }
  func.func @transform_10(%arg0: i32) -> (i32, i32) {
    %c0_i32 = arith.constant 0 : i32
    %c0_i32_0 = arith.constant 0 : i32
    %c0_i32_1 = arith.constant 0 : i32
    return %c0_i32, %c0_i32_0 : i32, i32
  }
  func.func @transform_11(%arg0: i32) -> (i32, i32) {
    %c0_i32 = arith.constant 0 : i32
    %c0_i32_0 = arith.constant 0 : i32
    return %arg0, %c0_i32 : i32, i32
  }
}

</mosaic_0001>

<bundles_post_ra>
// kernel: tpu_custom_call.1
= control target key start
LH: loop header
LB: loop body
LE: loop exit
PB: predicated region body
PF: predicated region fallthrough
CT: control target
= control target key end

     0   :  { %16 = vsyncpa [#allocation3], 0  ;;  %s680_s0 = inlined_call_operand.hbm [shape: f32[8,24], index: 0, kind: input, shape index: {}]   ;;  %s681_s1 = inlined_call_operand.hbm [shape: f32[8,8], index: 1, kind: input, shape index: {}]   ;;  %s682_s2 = inlined_call_operand.hbm [shape: bf16[24,64], index: 2, kind: input, shape index: {}]   ;;  %s683_s3 = inlined_call_operand.vmem [shape: bf16[8,64], index: 3, kind: input, shape index: {}]   ;;  %s684_s4 = inlined_call_operand.vmem [shape: f32[1,64], index: 4, kind: input, shape index: {}]   ;;  %s685_s5 = inlined_call_operand.vmem [shape: f32[1,64], index: 5, kind: input, shape index: {}]   ;;  %s686_s6 = inlined_call_operand.vmem [shape: f32[1,64], index: 6, kind: input, shape index: {}]   ;;  %s687_s7 = inlined_call_operand.hbm [shape: bf16[64,64], index: 7, kind: input, shape index: {}]   ;;  %s688_s8 = inlined_call_operand.vmem [shape: f32[1,64], index: 8, kind: input, shape index: {}]   ;;  %s689_s9 = inlined_call_operand.vmem [shape: f32[1,64], index: 9, kind: input, shape index: {}]   ;;  %s690_s10 = inlined_call_operand.vmem [shape: f32[1,2], index: 10, kind: input, shape index: {}]   ;;  %s691_s11 = inlined_call_operand.vmem [shape: f32[8,2], index: 11, kind: output, shape index: {}]  }
   0x1   :  { %17 = vsyncpa [#allocation5], 0 }
   0x2   :  { %18 = vsyncpa [#allocation8], 0  ;;  %s552_s17 = smov [#allocation4]   ;;  %s553_s19 = smov [#allocation2]  }
   0x3   :  { %s35_s18 = sshll.u32 %s552_s17, 4  ;;  %s25_s20 = sshll.u32 %s553_s19, 4  ;;  %s36_s18 = int_to_ptr.vmem [resolvable:$true] %s35_s18  ;;  %s26_s20 = int_to_ptr.vmem [resolvable:$true] %s25_s20 }
   0x4   :  { %s474_s21 = scalar_lea.vmem %s36_s18, 128  ;;  %p479_p1 = scmp.lt.s32.totalorder %s36_s18, %s36_s18 }
   0x5   :  { %p475_p0 = scmp.ne.s32.totalorder %s36_s18, %s474_s21  ;;  %p480_p2 = scmp.lt.s32.totalorder %s474_s21, %s474_s21 }
   0x7   :  { %p481_p3 = por %p480_p2, %p479_p1 }
   0x9   :  { %p482_p4 = pnand %p481_p3, %p475_p0 }
   0xb   :  { %485 = shalt.err (!%p482_p4)
}
   0xc   :  { %38 = dma.hbm_to_vmem [thread:$0]  %s681_s1, 128, %s36_s18, [#allocation5]  }
   0xd   :  { %s494_s24 = scalar_lea.vmem %s26_s20, 128  ;;  %p499_p6 = scmp.lt.s32.totalorder %s26_s20, %s26_s20 }
   0xe   :  { %p495_p5 = scmp.ne.s32.totalorder %s26_s20, %s494_s24  ;;  %p500_p7 = scmp.lt.s32.totalorder %s494_s24, %s494_s24 }
  0x10   :  { %p501_p8 = por %p500_p7, %p499_p6 }
  0x12   :  { %p502_p9 = pnand %p501_p8, %p495_p5 }
  0x14   :  { %505 = shalt.err (!%p502_p9)
}
  0x15   :  { %28 = dma.hbm_to_vmem [thread:$0]  %s680_s0, 128, %s26_s20, [#allocation3]  }
  0x16   :  { %s554_s27 = smov [#allocation6]  }
  0x17   :  { %s44_s28 = sshll.u32 %s554_s27, 4  ;;  %s45_s28 = int_to_ptr.vmem [resolvable:$true] %s44_s28 }
  0x18   :  { %s514_s29 = scalar_lea.vmem %s45_s28, 192  ;;  %p519_p11 = scmp.lt.s32.totalorder %s45_s28, %s45_s28 }
  0x19   :  { %p515_p10 = scmp.ne.s32.totalorder %s45_s28, %s514_s29  ;;  %p520_p12 = scmp.lt.s32.totalorder %s514_s29, %s514_s29 }
  0x1b   :  { %p521_p13 = por %p520_p12, %p519_p11 }
  0x1d   :  { %p522_p0 = pnand %p521_p13, %p515_p10 }
  0x1f   :  { %525 = shalt.err (!%p522_p0)
}
  0x20   :  { %s555_s1 = smov 64   ;;  %s556_s30 = smov 4  }
  0x21   :  { %50 = dma.hbm_to_vmem [thread:$0]  %s682_s2, 192, %s45_s28, [#allocation5], %s555_s1, %s555_s1, %s556_s30  }
  0x22   :  { %s557_s14 = smov [#allocation7]  }
  0x23   :  { %s64_s15 = sshll.u32 %s557_s14, 4  ;;  %s65_s15 = int_to_ptr.vmem [resolvable:$true] %s64_s15 }
  0x24   :  { %s534_s0 = scalar_lea.vmem %s65_s15, 512  ;;  %p539_p2 = scmp.lt.s32.totalorder %s65_s15, %s65_s15 }
  0x25   :  { %p535_p1 = scmp.ne.s32.totalorder %s65_s15, %s534_s0  ;;  %p540_p3 = scmp.lt.s32.totalorder %s534_s0, %s534_s0 }
  0x27   :  { %p541_p4 = por %p540_p3, %p539_p2 }
  0x29   :  { %p542_p5 = pnand %p541_p4, %p535_p1 }
  0x2b   :  { %545 = shalt.err (!%p542_p5)
}
  0x2c   :  { %70 = dma.hbm_to_vmem [thread:$0]  %s687_s7, 512, %s65_s15, [#allocation8], %s555_s1, %s555_s1, %s556_s30  }
  0x2d   :  { %546 = dma.done.wait [#allocation3], 128  }
  0x2e   :  { %547 = vsyncadd [#allocation3], 4294967168 }
  0x2f   :  { %548 = dma.done.wait [#allocation5], 320  }
  0x30   :  { %549 = vsyncadd [#allocation5], 4294966976 }
  0x31   :  { %550 = dma.done.wait [#allocation8], 512  }
  0x32   :  { %551 = vsyncadd [#allocation8], 4294966784  ;;  %v558_v0 = vmov 0.0   ;;  %vm559_vm0 = vmmov 0   ;;  %vm102_vm1 = vcmask 1043456   ;;  %v92_v4 = vld [vmem:[#allocation4] sm:$0xff] }
  0x33   :  { %417 = vmatprep.subr.bf16.mxu1 %v558_v0  ;;  %419 = vmatprep.mubr.msk.bf16.mxu1 %vm559_vm0, %v558_v0  ;;  %v97_v1 = vld [vmem:[%s683_s3] sm:$0xf]  ;;  %v452_v2 = vld [vmem:[#allocation6 + $0x8] ss:$0 sps:$4 sm:$0xff]   ;;  %v93_v6 = vpack.c.bf16 %v92_v4, %v92_v4  ;;  %vm98_vm2 = vcmask 64512   ;;  %v453_v7 = vld [vmem:[#allocation6] sm:$0xff]  }
  0x34   :  { %431 = vmatprep.subr.bf16.mxu0 %v558_v0  ;;  %439 = vmatprep.mubr.msk.bf16.mxu0 %vm559_vm0, %v558_v0  ;;  %v104_v3 = vsel %vm102_vm1, %v97_v1, 0  ;;  %v160_v5 = vsel %vm102_vm1, %v452_v2, 0  ;;  %v90_v8 = vld [vmem:[#allocation2] sm:$0xff]  ;;  %vm155_vm3 = vcmask 195584   ;;  %vm210_vm4 = vcmask 261120   ;;  %s560_s19 = smov 96  }
  0x35   :  { %418 = vmatpush3.bf16.msra.mxu1 %v104_v3  ;;  %v91_v9 = vpack.c.bf16 %v90_v8, %v90_v8  ;;  %v395_v15 = vld [vmem:[%s684_s4] ss:$0 sm:$0xff]  ;;  %v454_v35 = vld [vmem:[#allocation7 + $0x18] sm:$0xff]   ;;  %v455_v36 = vld [vmem:[#allocation7 + $0x10] sm:$0xff]   ;;  %vm304_vm5 = vcmask 523264   ;;  %vm372_vm7 = vcmask 7168  }
  0x36   :  { %423 = vmatprep.subr.bf16.mxu1 %v558_v0  ;;  %432 = vmatpush3.bf16.msra.mxu0 %v454_v35  ;;  %v456_v37 = vld [vmem:[#allocation7 + $0x8] sm:$0xff]   ;;  %v457_v38 = vld [vmem:[#allocation7] sm:$0xff]   ;;  %vm382_vm8 = vcmask 15360  }
  0x37   :  { %433 = vmatprep.subr.bf16.mxu0 %v558_v0  ;;  %v396_v49 = vld [vmem:[%s685_s5] ss:$0 sm:$0xff] }
  0x38   :  { %420 = vmatmul.mubr.msk.bf16.vlgmr.msra.gmra.mxu1 %vm98_vm2, %v93_v6  ;;  %v397_v51 = vld [vmem:[%s686_s6] ss:$0 sm:$0xff] }
  0x39   :  { %424 = vmatpush3.bf16.msra.mxu1 %v160_v5  ;;  %427 = vmatprep.mubr.msk.bf16.mxu1 %vm559_vm0, %v558_v0  ;;  %v398_v56 = vld [vmem:[%s688_s8] ss:$0 sm:$0xff] }
  0x3a   :  { %425 = vmatprep.subr.bf16.mxu1 %v558_v0  ;;  %434 = vmatpush3.bf16.msra.mxu0 %v455_v36  ;;  %v405_v2 = vld [vmem:[%s689_s9] ss:$0 sm:$0xff] }
  0x3b   :  { %435 = vmatprep.subr.bf16.mxu0 %v558_v0  ;;  %v406_v8 = vld [vmem:[%s690_s10] ss:$0 sm:$0xff] }
  0x3d   :  { %426 = vmatpush3.bf16.msra.mxu1 %v453_v7 }
  0x3e   :  { %436 = vmatpush3.bf16.msra.mxu0 %v456_v37 }
  0x3f   :  { %437 = vmatprep.subr.bf16.mxu0 %v558_v0 }
  0x40   :  { %428 = vmatmul.mubr.msk.bf16.vlgmr.msra.gmra.mxu1 %vm155_vm3, %v91_v9 }
  0x42   :  { %438 = vmatpush3.bf16.msra.mxu0 %v457_v38 }
  0xf8   :  { %v140_v10 = vpop.f32.mrf.mxu1 }
  0xfa   :  { %v421_v11 = vpop.f32.mrf.mxu1 }
  0xfc   :  { %v143_v12 = vpop.f32.mrf.mxu1 }
  0xfe   :  { %v422_v13 = vpop.f32.mrf.mxu1 }
 0x100   :  { %v196_v14 = vpop.f32.mrf.mxu1 }
 0x101   :  { %v197_v16 = vadd.f32 %v196_v14, %v140_v10 }
 0x102   :  { %v429_v17 = vpop.f32.mrf.mxu1 }
 0x103   :  { %v209_v18 = vadd.f32 %v395_v15, %v197_v16 }
 0x104   :  { %v199_v19 = vpop.f32.mrf.mxu1 }
 0x105   :  { %226 = vrot.lane.b32.xlu0 %v209_v18, %s560_s19  ;;  %v211_v20 = vsel %vm210_vm4, %v209_v18, 0.0 }
 0x106   :  { %212 = vadd.xlane.f32.xlu1 %v211_v20  ;;  %v430_v21 = vpop.f32.mrf.mxu1 }
 0x177   :  { %v227_v22 = vpop.permute.xlu0 %226 }
 0x178   :  { %v229_v23 = vsel %vm210_vm4, %v227_v22, 0.0 }
 0x179   :  { %230 = vadd.xlane.f32.xlu0 %v229_v23 }
 0x18f   :  { %v213_v28 = vpop.xlane.xlu1 %212 }
 0x190   :  { %v215_v29 = vmul.f32 0.03125, %v213_v28 }
 0x192   :  { %v216_v30 = vsub.f32 %v209_v18, %v215_v29 }
 0x194   :  { %v217_v31 = vmul.f32 %v216_v30, %v216_v30 }
 0x196   :  { %v218_v32 = vsel %vm210_vm4, %v217_v31, 0.0 }
 0x202   :  { %v231_v24 = vpop.xlane.xlu0 %230 }
 0x203   :  { %v232_v25 = vmul.f32 0.03125, %v231_v24 }
 0x205   :  { %v233_v26 = vsub.f32 %v209_v18, %v232_v25 }
 0x207   :  { %v234_v27 = vmul.f32 %v233_v26, %v233_v26 }
 0x209   :  { %236 = vrot.lane.b32.xlu1 %v234_v27, %s560_s19 }
 0x22d   :  { %219 = vadd.xlane.f32.xlu1 %v218_v32 }
 0x27b   :  { %v237_v33 = vpop.permute.xlu1 %236 }
 0x27c   :  { %v239_v34 = vsel %vm210_vm4, %v237_v33, 0.0 }
 0x27d   :  { %240 = vadd.xlane.f32.xlu0 %v239_v34 }
 0x2b6   :  { %v220_v39 = vpop.xlane.xlu1 %219 }
 0x2b7   :  { %v221_v40 = vmul.f32 0.03125, %v220_v39 }
 0x2b9   :  { %v222_v41 = vadd.f32 1e-05, %v221_v40 }
 0x2bb   :  { %458 = vrsqrt.f32 %v222_v41 }
 0x2c8   :  { %v459_v45 = vpop.eup %458 }
 0x2c9   :  { %v224_v47 = vmul.f32 %v459_v45, %v216_v30 }
 0x306   :  { %v241_v42 = vpop.xlane.xlu0 %240 }
 0x307   :  { %v242_v43 = vmul.f32 0.03125, %v241_v42 }
 0x309   :  { %v243_v44 = vadd.f32 1e-05, %v242_v43 }
 0x30b   :  { %460 = vrsqrt.f32 %v243_v44 }
 0x318   :  { %v461_v46 = vpop.eup %460 }
 0x319   :  { %v245_v48 = vmul.f32 %v461_v46, %v233_v26 }
 0x31b   :  { %v246_v50 = vsel %vm210_vm4, %v224_v47, %v245_v48 }
 0x31c   :  { %v254_v52 = vmul.f32 %v396_v49, %v246_v50 }
 0x31e   :  { %v262_v53 = vadd.f32 %v397_v51, %v254_v52 }
 0x320   :  { %462 = vtanh.f32 %v262_v53 }
 0x32d   :  { %v463_v54 = vpop.eup %462 }
 0x32e   :  { %v264_v55 = vpack.c.bf16 %v463_v54, %v463_v54 }
 0x330   :  { %440 = vmatmul.mubr.msk.bf16.vlgmr.msra.gmra.mxu0 %vm304_vm5, %v264_v55 }
 0x3f0   :  { %v342_v57 = vpop.f32.mrf.mxu0 }
 0x3f1   :  { %v343_v58 = vadd.f32 %v398_v56, %v342_v57 }
 0x3f2   :  { %v441_v59 = vpop.f32.mrf.mxu0 }
 0x3f3   :  { %v349_v60 = vmin.f32 %v343_v58, 0.0  ;;  %vm348_vm6 = vcmp.gt.f32.partialorder %v343_v58, 0.0 }
 0x3f4   :  { %v345_v61 = vpop.f32.mrf.mxu0 }
 0x3f5   :  { %v350_v62 = vmul.f32 1.442695, %v349_v60 }
 0x3f6   :  { %v442_v63 = vpop.f32.mrf.mxu0 }
 0x3f7   :  { %464 = vpow2.f32 %v350_v62 }
 0x404   :  { %v465_v0 = vpop.eup %464 }
 0x405   :  { %v404_v1 = vadd.f32 -1.0, %v465_v0 }
 0x407   :  { %v353_v3 = vsel %vm348_vm6, %v343_v58, %v404_v1 }
 0x408   :  { %v361_v4 = vmul.f32 %v405_v2, %v353_v3 }
 0x40a   :  { %366 = vrot.lane.b32.xlu0 %v361_v4, %s560_s19  ;;  %v362_v5 = vsel %vm210_vm4, %v361_v4, 0.0 }
 0x40b   :  { %363 = vadd.xlane.f32.xlu1 %v362_v5 }
 0x47c   :  { %v367_v6 = vpop.permute.xlu0 %366 }
 0x47d   :  { %v369_v7 = vsel %vm210_vm4, %v367_v6, 0.0 }
 0x47e   :  { %370 = vadd.xlane.f32.xlu0 %v369_v7 }
 0x494   :  { %v364_v9 = vpop.xlane.xlu1 %363 }
 0x507   :  { %v371_v10 = vpop.xlane.xlu0 %370 }
 0x508   :  { %v373_v11 = vsel %vm372_vm7, %v364_v9, %v371_v10 }
 0x509   :  { %v381_v12 = vadd.f32 %v406_v8, %v373_v11 }
 0x50b   :  { %383 = vst.msk [vmem:[%s691_s11] sm:$0xff] %vm382_vm8, %v381_v12 }
 0x50c   :  { %388 = vsyncpa [#allocation3], 1 }
 0x50d   :  { %389 = vsyncpa [#allocation5], 1 }
 0x50e   :  { %390 = vsyncpa [#allocation8], 1 }

</bundles_post_ra>
